<compile_context>
chip_gen: v6e
topology: v6e:2x2x1
jax: 0.10.0
libtpu: 0.0.40
codegen_flags: <defaults>
</compile_context>

<pallas_src>
import functools

import jax
import jax.numpy as jnp
from jax.experimental import pallas as pl
from jax.experimental.pallas import tpu as pltpu


def _round_up(x: int, m: int) -> int:
    return ((x + m - 1) // m) * m


# --------------------------------------------------------------------------
# Kernels
# --------------------------------------------------------------------------
def _ffn_kernel_single_k(x_ref, w_ref, b_ref, o_ref):
    # Whole contraction in one MXU pass: no accumulator, no revisit logic.
    y = jnp.dot(x_ref[...], w_ref[...], preferred_element_type=jnp.float32)
    o_ref[...] = jnp.maximum(y + b_ref[...], 0.0).astype(o_ref.dtype)


def _ffn_kernel_multi_k(x_ref, w_ref, b_ref, o_ref, acc_ref):
    # CORRECTNESS NOTE: this kernel requires K to be the *innermost* grid axis
    # and to be marked "arbitrary" (the output block index is constant across
    # K, so the accumulator persists and the epilogue fires on the last step).
    k = pl.program_id(2)

    @pl.when(k == 0)
    def _():
        acc_ref[...] = jnp.zeros_like(acc_ref)

    acc_ref[...] += jnp.dot(
        x_ref[...], w_ref[...], preferred_element_type=jnp.float32
    )

    @pl.when(k == pl.num_programs(2) - 1)
    def _():
        y = acc_ref[...] + b_ref[...]          # bias add once, in f32
        o_ref[...] = jnp.maximum(y, 0.0).astype(o_ref.dtype)


# --------------------------------------------------------------------------
# Tiling / budget helpers
# --------------------------------------------------------------------------
def _vmem_budget_bytes() -> int:
    # Per-generation clamp: ~75% of physical VMEM (=> ~48 MiB on v7x,
    # ~96 MiB on v5e/v6e).  Conservative 64 MiB fallback if the query fails.
    try:
        cap = int(pltpu.get_tpu_info().vmem_capacity_bytes)
    except Exception:
        cap = 64 * 1024 * 1024
    return int(cap * 0.75)


def _vmem_footprint(tm, tn, tk, ib, ob, with_acc):
    # Double-buffered x / w / bias / out tiles (+ f32 accumulator if used).
    f = 2 * (tm * tk * ib + tk * tn * ib + tn * 4 + tm * tn * ob)
    if with_acc:
        f += tm * tn * 4
    return f


def _divisor_tile(total, cap):
    """Largest multiple of 128 that divides `total` (a multiple of 128) and
    is <= cap.  Guarantees exact grids (no boundary blocks on that axis)."""
    best = 128
    d = 256
    limit = min(cap, total)
    while d <= limit:
        if total % d == 0:
            best = d
        d += 128
    return best


def _select_tiles(M, H, ib, ob, sub, budget, tile_m, tile_n, tile_k):
    """Returns (tm, tn, tk, single_k, Hk) where Hk is the (possibly padded)
    contraction extent x/w must be zero-padded to."""

    def init_tm():
        if M <= tile_m:
            return M                      # full-dim block: legal, no M padding
        return max(sub, (tile_m // sub) * sub)

    def shrink_tm(tm):
        return max(sub, _round_up(tm // 2, sub))

    # --- Path A: H is not lane-dense -> try whole-H (full-dim) tiles, no pad.
    if H % 128 != 0:
        tm = init_tm()
        while tm > sub and _vmem_footprint(tm, H, H, ib, ob, False) > budget:
            tm = shrink_tm(tm)
        if _vmem_footprint(tm, H, H, ib, ob, False) <= budget:
            return tm, H, H, True, H      # single K step, no padding anywhere
        Hp = _round_up(H, 128)            # too big: fall back to padded tiling
    else:
        Hp = H

    # --- Path B: lane-dense tiles, single-K fast path (tk = full contraction).
    tn = _divisor_tile(Hp, max(128, tile_n))
    tm = init_tm()
    while tm > sub and _vmem_footprint(tm, tn, Hp, ib, ob, False) > budget:
        tm = shrink_tm(tm)
    if _vmem_footprint(tm, tn, Hp, ib, ob, False) <= budget:
        return tm, tn, Hp, True, Hp

    # --- Path C: K-tiled path with f32 accumulator scratch.
    tk = _divisor_tile(Hp, max(128, tile_k))
    tm = init_tm()
    while _vmem_footprint(tm, tn, tk, ib, ob, True) > budget:
        if tn > 128:
            tn = _divisor_tile(Hp, tn // 2)
        elif tk > 128:
            tk = _divisor_tile(Hp, tk // 2)
        elif tm > sub:
            tm = shrink_tm(tm)
        else:
            break
    return tm, tn, tk, False, Hp


# --------------------------------------------------------------------------
# Public wrapper
# --------------------------------------------------------------------------
def feed_forward(
    x,
    w,
    b,
    *,
    tile_m: int = 512,
    tile_n: int = 1024,
    tile_k: int = 1024,
    compute_dtype=jnp.bfloat16,
    out_dtype=None,
):
    """relu(x @ w + b) for x:(..., H), w:(H, H), b:(H,)."""
    orig_shape = x.shape
    H = orig_shape[-1]
    out_dtype = out_dtype or x.dtype

    x2 = x.reshape(-1, H)
    M = x2.shape[0]

    # MXU-native compute dtype (bf16 by default), f32 accumulation.
    # For repeated calls, pre-cast / cache W outside this function; the dtype
    # guards below then skip the redundant per-call cast.
    if compute_dtype is not None:
        if x2.dtype != compute_dtype:
            x2 = x2.astype(compute_dtype)
        if w.dtype != compute_dtype:
            w = w.astype(compute_dtype)
    in_dtype = x2.dtype
    ib = jnp.dtype(in_dtype).itemsize
    ob = jnp.dtype(out_dtype).itemsize
    sub = {4: 8, 2: 16, 1: 32}.get(ib, 8)       # sublane tile per dtype

    budget = _vmem_budget_bytes()
    tm, tn, tk, single_k, Hk = _select_tiles(
        M, H, ib, ob, sub, budget, tile_m, tile_n, tile_k
    )

    # Zero-pad ONLY where correctness requires it: the contraction (K) dim of
    # x and w.  M / N boundary blocks rely on Pallas' masked boundary handling
    # (out-of-bounds garbage only ever feeds rows/cols that are never written).
    if Hk != H:
        x2 = jnp.pad(x2, ((0, 0), (0, Hk - H)))
        w = jnp.pad(w, ((0, Hk - H), (0, 0)))
    b2 = b.astype(jnp.float32).reshape(1, H)

    grid_m = pl.cdiv(M, tm)
    grid_n = pl.cdiv(H, tn)
    grid_k = Hk // tk                            # tk always divides Hk

    # Megacore (v7x, 2 TCs): make sure the leading parallel axis has >= 2
    # blocks when possible; no-op on single-TC v5e/v6e.
    swap_mn = (grid_m == 1 and grid_n >= 2)

    if single_k:
        if swap_mn:
            grid = (grid_n, grid_m)
            x_map = lambda j, i: (i, 0)
            w_map = lambda j, i: (0, j)
            b_map = lambda j, i: (0, j)
            o_map = lambda j, i: (i, j)
        else:
            grid = (grid_m, grid_n)
            x_map = lambda i, j: (i, 0)
            w_map = lambda i, j: (0, j)
            b_map = lambda i, j: (0, j)
            o_map = lambda i, j: (i, j)
        kernel = _ffn_kernel_single_k
        scratch = []
        dims = ("parallel", "parallel")
    else:
        if swap_mn:
            grid = (grid_n, grid_m, grid_k)
            x_map = lambda j, i, k: (i, k)
            w_map = lambda j, i, k: (k, j)
            b_map = lambda j, i, k: (0, j)
            o_map = lambda j, i, k: (i, j)
        else:
            grid = (grid_m, grid_n, grid_k)
            x_map = lambda i, j, k: (i, k)
            w_map = lambda i, j, k: (k, j)
            b_map = lambda i, j, k: (0, j)
            o_map = lambda i, j, k: (i, j)
        kernel = _ffn_kernel_multi_k
        scratch = [pltpu.VMEM((tm, tn), jnp.float32)]
        # K is the innermost axis and MUST stay "arbitrary".
        dims = ("parallel", "parallel", "arbitrary")

    cost = pl.CostEstimate(
        flops=2 * M * H * H,
        transcendentals=0,
        bytes_accessed=(M * Hk * ib + Hk * H * ib + H * 4 + M * H * ob),
    )

    out = pl.pallas_call(
        kernel,
        out_shape=jax.ShapeDtypeStruct((M, H), out_dtype),
        grid_spec=pltpu.PrefetchScalarGridSpec(
            num_scalar_prefetch=0,
            grid=grid,
            in_specs=[
                pl.BlockSpec((tm, tk), x_map),   # x tile
                pl.BlockSpec((tk, tn), w_map),   # w tile
                pl.BlockSpec((1, tn), b_map),    # bias slice (f32)
            ],
            out_specs=pl.BlockSpec((tm, tn), o_map),
            scratch_shapes=scratch,
        ),
        compiler_params=pltpu.CompilerParams(
            dimension_semantics=dims,
            vmem_limit_bytes=budget,
        ),
        cost_estimate=cost,
    )(x2, w, b2)

    return out.reshape(orig_shape)


def _reference(x, w, b):
    return jax.nn.relu(jnp.einsum("...i,io->...o", x, w) + b)


if __name__ == "__main__":
    batch, seq, hidden = 2, 8, 32

    key = jax.random.PRNGKey(0)
    kx, kw, kb = jax.random.split(key, 3)

    # Deterministic parameter init (shapes follow nn.Linear(hidden, hidden)).
    bound = 1.0 / (hidden ** 0.5)
    w = jax.random.uniform(kw, (hidden, hidden), jnp.float32, -bound, bound)
    b = jax.random.uniform(kb, (hidden,), jnp.float32, -bound, bound)
    x = jax.random.normal(kx, (batch, seq, hidden), jnp.float32)

    y_ref = _reference(x, w, b)

    # Default path: bf16 operands on the MXU, f32 accumulate + f32 bias/ReLU.
    ffn_bf16 = jax.jit(feed_forward)
    y = jax.block_until_ready(ffn_bf16(x, w, b))
    assert y.shape == (batch, seq, hidden)
    assert jnp.allclose(y, y_ref, atol=2e-2, rtol=2e-2), "bf16 mismatch vs reference"

    # Pure-f32 path for a tight numerical check.
    ffn_f32 = jax.jit(functools.partial(feed_forward, compute_dtype=None))
    y32 = jax.block_until_ready(ffn_f32(x, w, b))
    assert y32.shape == (batch, seq, hidden)
    assert jnp.allclose(y32, y_ref, atol=1e-5, rtol=1e-5), "f32 mismatch vs reference"

    print("KERNEL_OK")
</pallas_src>

<mosaic_0001>
module attributes {stable_mosaic.version = 11 : i64} {
  func.func @_ffn_kernel_single_k(%arg0: i32, %arg1: i32, %arg2: memref<16x32xbf16, #tpu.memory_space<vmem>>, %arg3: memref<32x32xbf16, #tpu.memory_space<vmem>>, %arg4: memref<1x32xf32, #tpu.memory_space<vmem>>, %arg5: memref<16x32xf32, #tpu.memory_space<vmem>>) attributes {dimension_semantics = [#tpu.dimension_semantics<parallel>, #tpu.dimension_semantics<parallel>], iteration_bounds = array<i64: 1, 1>, scalar_prefetch = 0 : i64, scratch_operands = 0 : i64, tpu.core_type = #tpu.core_type<tc>, window_params = [{transform_indices = @transform_0, window_bounds = array<i64: 16, 32>}, {transform_indices = @transform_1, window_bounds = array<i64: 32, 32>}, {transform_indices = @transform_2, window_bounds = array<i64: 1, 32>}, {transform_indices = @transform_3, window_bounds = array<i64: 16, 32>}]} {
    %c0 = arith.constant 0 : index
    %c0_0 = arith.constant 0 : index
    %0 = vector.load %arg2[%c0, %c0_0] : memref<16x32xbf16, #tpu.memory_space<vmem>>, vector<16x32xbf16>
    %c0_1 = arith.constant 0 : index
    %c0_2 = arith.constant 0 : index
    %1 = vector.load %arg3[%c0_1, %c0_2] : memref<32x32xbf16, #tpu.memory_space<vmem>>, vector<32x32xbf16>
    %cst = arith.constant dense<0.000000e+00> : vector<16x32xf32>
    %2 = tpu.matmul %0, %1, %cst {dimension_numbers = #tpu.dot_dimension_numbers<[1], [0], [0], [1], [0, 0, 1, 1], [], []>} : vector<16x32xbf16>, vector<32x32xbf16>, vector<16x32xf32> -> vector<16x32xf32>
    %c0_3 = arith.constant 0 : index
    %c0_4 = arith.constant 0 : index
    %3 = vector.load %arg4[%c0_3, %c0_4] : memref<1x32xf32, #tpu.memory_space<vmem>>, vector<1x32xf32>
    %4 = vector.broadcast %3 : vector<1x32xf32> to vector<16x32xf32>
    %5 = arith.addf %2, %4 : vector<16x32xf32>
    %cst_5 = arith.constant 0.000000e+00 : f32
    %6 = vector.broadcast %cst_5 : f32 to vector<16x32xf32>
    %7 = arith.maximumf %5, %6 : vector<16x32xf32>
    %c0_6 = arith.constant 0 : index
    %c0_7 = arith.constant 0 : index
    %8 = vector.load %arg5[%c0_6, %c0_7] : memref<16x32xf32, #tpu.memory_space<vmem>>, vector<16x32xf32>
    tpu.vector_store %arg5[%c0_6, %c0_7], %7 {strides = array<i32>} : memref<16x32xf32, #tpu.memory_space<vmem>>, vector<16x32xf32>,
    return
  }
  func.func @transform_0(%arg0: i32, %arg1: i32) -> (i32, i32) {
    %c0_i32 = arith.constant 0 : i32
    %c0_i32_0 = arith.constant 0 : i32
    return %arg0, %c0_i32 : i32, i32
  }
  func.func @transform_1(%arg0: i32, %arg1: i32) -> (i32, i32) {
    %c0_i32 = arith.constant 0 : i32
    %c0_i32_0 = arith.constant 0 : i32
    return %c0_i32, %arg1 : i32, i32
  }
  func.func @transform_2(%arg0: i32, %arg1: i32) -> (i32, i32) {
    %c0_i32 = arith.constant 0 : i32
    %c0_i32_0 = arith.constant 0 : i32
    return %c0_i32, %arg1 : i32, i32
  }
  func.func @transform_3(%arg0: i32, %arg1: i32) -> (i32, i32) {
    %c0_i32 = arith.constant 0 : i32
    return %arg0, %arg1 : i32, i32
  }
}

</mosaic_0001>

<bundles_post_ra>
// kernel: feed_forward.1
= control target key start
LH: loop header
LB: loop body
LE: loop exit
PB: predicated region body
PF: predicated region fallthrough
CT: control target
= control target key end

     0   :  { %v157_v1 = vmov 0.0   ;;  %vm158_vm0 = vmmov 0   ;;  %s197_s0 = inlined_call_operand.vmem [shape: bf16[16,32], index: 0, kind: input, shape index: {}]   ;;  %s198_s1 = inlined_call_operand.vmem [shape: bf16[32,32], index: 1, kind: input, shape index: {}]   ;;  %s199_s2 = inlined_call_operand.vmem [shape: f32[1,32], index: 2, kind: input, shape index: {}]   ;;  %s200_s3 = inlined_call_operand.hbm [shape: f32[16,32], index: 3, kind: output, shape index: {}]  }
   0x1   :  { %v132_v0 = vld [vmem:[%s198_s1 + $0x8] sm:$0xff]   ;;  %119 = vmatprep.subr.bf16.mxu0 %v157_v1  ;;  %v133_v2 = vld [vmem:[%s198_s1] sm:$0xff]   ;;  %123 = vmatprep.mubr.msk.bf16.mxu0 %vm158_vm0, %v157_v1 }
   0x2   :  { %120 = vmatpush3.bf16.msra.mxu0 %v132_v0 }
   0x3   :  { %121 = vmatprep.subr.bf16.mxu0 %v157_v1 }
   0x4   :  { %8 = vsyncpa [#allocation3], 0  ;;  %v134_v3 = vld [vmem:[%s197_s0] sm:$0xff]   ;;  %vm46_vm1 = vcmask 261120   ;;  %s159_s1 = smov [#allocation2]  }
   0x5   :  { %v111_v4 = vld [vmem:[%s199_s2] ss:$0 sm:$0xff]  ;;  %s100_s20 = sshll.u32 %s159_s1, 4  ;;  %s101_s20 = int_to_ptr.vmem [resolvable:$true] %s100_s20 }
   0x6   :  { %122 = vmatpush3.bf16.msra.mxu0 %v133_v2  ;;  %s135_s0 = scalar_lea.vmem %s101_s20, 256  ;;  %p140_p1 = scmp.lt.s32.totalorder %s101_s20, %s101_s20 }
   0x7   :  { %p136_p0 = scmp.ne.s32.totalorder %s101_s20, %s135_s0  ;;  %p141_p2 = scmp.lt.s32.totalorder %s135_s0, %s135_s0 }
   0x9   :  { %124 = vmatmul.mubr.msk.bf16.vlgmr.msra.gmra.mxu0 %vm46_vm1, %v134_v3  ;;  %p142_p3 = por %p141_p2, %p140_p1 }
   0xb   :  { %p143_p4 = pnand %p142_p3, %p136_p0 }
  0xc9   :  { %v84_v5 = vpop.f32.mrf.mxu0 }
  0xca   :  { %v85_v6 = vadd.f32 %v111_v4, %v84_v5 }
  0xcb   :  { %v125_v7 = vpop.f32.mrf.mxu0 }
  0xcc   :  { %v91_v8 = vmax.f32 %v85_v6, 0.0 }
  0xcd   :  { %v87_v9 = vpop.f32.mrf.mxu0 }
  0xce   :  { %93 = vst.msk [vmem:[#allocation2] sm:$0xff] %vm46_vm1, %v91_v8  ;;  %v88_v10 = vadd.f32 %v111_v4, %v87_v9 }
  0xcf   :  { %v126_v11 = vpop.f32.mrf.mxu0 }
  0xd0   :  { %v92_v12 = vmax.f32 %v88_v10, 0.0 }
  0xd2   :  { %94 = vst.msk [vmem:[#allocation2 + $0x8] sm:$0xff] %vm46_vm1, %v92_v12 }
  0xd3   :  { %146 = shalt.err (!%p143_p4)
}
  0xd4   :  { %s160_s2 = smov 128   ;;  %s161_s21 = smov 8  }
  0xd5   :  { %106 = dma.vmem_to_hbm [thread:$0]  %s101_s20, 256, %s200_s3, [#allocation3], %s160_s2, %s160_s2, %s161_s21  }
  0xd6   :  { %155 = dma.done.wait [#allocation3], 256  }
  0xd7   :  { %156 = vsyncadd [#allocation3], 4294967040 }
  0xd8   :  { %110 = vsyncpa [#allocation3], 1 }

</bundles_post_ra>
